<compile_context>
chip_gen: v7x
topology: tpu7x:2x2x1
jax: 0.10.0
libtpu: 0.0.40
codegen_flags: <defaults>
</compile_context>

<pallas_src>
import math

import jax
import jax.numpy as jnp
from jax.experimental import pallas as pl
from jax.experimental.pallas import tpu as pltpu


# ---------------------------------------------------------------------------
# Hardware-aware helpers.
# ---------------------------------------------------------------------------
def _vmem_capacity_bytes():
    try:
        return int(pltpu.get_tpu_info().vmem_capacity_bytes)
    except Exception:
        return 64 << 20  # conservative default (v7x-sized VMEM)


def _vmem_budget_bytes():
    cap = _vmem_capacity_bytes()
    # ~100 MiB usable on 128 MiB parts (v5e/v6e), ~44 MiB on 64 MiB parts (v7x).
    return max(32 << 20, min(cap - (20 << 20), int(cap * 0.78)))


def _vmem_limit(nbytes):
    return int(min(max(int(nbytes), 32 << 20), _vmem_budget_bytes()))


def _ceil_to(v, m):
    return ((v + m - 1) // m) * m


def _padded_block_bytes(rows, lanes, itemsize):
    # VMEM footprint of a (rows, lanes) tile: rows pad to 8 sublanes, lanes to 128.
    return _ceil_to(max(rows, 1), 8) * _ceil_to(max(lanes, 1), 128) * itemsize


def _pick_tb(B, sample_block_bytes, target_bytes=4 << 20, min_steps=8):
    """Pack TB samples per grid step (~2-4 MiB blocks) without letting the grid
    collapse below min(B, min_steps) steps (megacore + pipelining)."""
    want_steps = min(B, min_steps)
    for cand in range(B, 0, -1):
        if B % cand:
            continue
        if cand * sample_block_bytes <= target_bytes and (B // cand) >= want_steps:
            return cand
    return 1


def _effective_taps(conv_weight):
    """Effective 1-D channel filter of the module's conv (middle row of the
    (1,1,K,K) Conv2d weight; a Conv1d-style (1,1,K) weight is also accepted)."""
    w = jnp.asarray(conv_weight, jnp.float32)
    if w.ndim == 4:
        kh = int(w.shape[2])
        taps = w[0, 0, (kh - 1) // 2, :]
    elif w.ndim == 3:
        taps = w[0, 0, :]
    else:
        raise ValueError("conv_weight must be (1,1,K,K) or (1,1,K)")
    K = int(taps.shape[0])
    return taps, K, (K - 1) // 2


# ---------------------------------------------------------------------------
# In-kernel math helpers.
# ---------------------------------------------------------------------------
def _pooled_mean_f32(xblk, hw_total):
    """Mean over the last axis with f32 accumulation; 16-bit inputs accumulate
    in lane chunks so no full-block f32 temporary is materialized."""
    n = xblk.shape[-1]
    if xblk.dtype.itemsize >= 4 or n <= 2048:
        s = jnp.sum(xblk, axis=-1, dtype=jnp.float32)
    else:
        chunk = _ceil_to(pl.cdiv(n, 16), 128)
        s = jnp.zeros(xblk.shape[:-1], jnp.float32)
        for c0 in range(0, n, chunk):
            c1 = min(c0 + chunk, n)
            s = s + jnp.sum(xblk[..., c0:c1], axis=-1, dtype=jnp.float32)
    return s * (1.0 / hw_total)


def _conv_sigmoid_smem(pooled, w_ref, K, pad):
    """K-tap zero-padded cross-correlation over channels + sigmoid.
    pooled: (TB, C) f32 channel means; w_ref: SMEM (1, K)."""
    TB, C = pooled.shape
    if pad > 0:
        z = jnp.zeros((TB, pad), jnp.float32)
        padded = jnp.concatenate([z, pooled, z], axis=1)
    else:
        padded = pooled
    conv = jnp.zeros((TB, C), jnp.float32)
    for k in range(K):  # K is small & static
        conv = conv + w_ref[0, k] * padded[:, k:k + C]
    return jax.nn.sigmoid(conv)


def _shift_rows(p, q):
    """result[:, r] = p[:, r + q], zero-filled outside [0, Cg)."""
    if q == 0:
        return p
    TB, Cg = p.shape
    if abs(q) >= Cg:
        return jnp.zeros_like(p)
    z = jnp.zeros((TB, abs(q)), p.dtype)
    if q > 0:
        return jnp.concatenate([p[:, q:], z], axis=1)
    return jnp.concatenate([z, p[:, :q]], axis=1)


def _grouped_conv_sigmoid(p_list, w_ref, K, pad):
    """K-tap channel conv + sigmoid evaluated in the grouped layout.
    p_list[i]: (TB, Cg) pooled means for channels c = r*g + i."""
    g = len(p_list)
    attn = []
    for i in range(g):
        logit = jnp.zeros_like(p_list[0])
        for t in range(K):
            # channel c + t - pad  ==  row r+q, intra-group offset rem
            q, rem = divmod(i + t - pad, g)
            logit = logit + w_ref[0, t] * _shift_rows(p_list[rem], q)
        attn.append(jax.nn.sigmoid(logit))
    return attn


# ---------------------------------------------------------------------------
# Path 1a: fused single-pass kernel, (TB, C, HW) blocks (HW already lane-dense).
# ---------------------------------------------------------------------------
def _eca_fused(x3, w_mid, K, pad, TB):
    B, C, HW = x3.shape

    def kernel(w_ref, x_ref, o_ref):
        xblk = x_ref[...]                                    # (TB, C, HW)
        pooled = _pooled_mean_f32(xblk, HW)                  # (TB, C)
        attn = _conv_sigmoid_smem(pooled, w_ref, K, pad)     # (TB, C)
        o_ref[...] = xblk * attn.astype(xblk.dtype)[:, :, None]

    blk = _padded_block_bytes(C, HW, x3.dtype.itemsize) * TB
    need = 6 * blk + (4 << 20)
    return pl.pallas_call(
        kernel,
        out_shape=jax.ShapeDtypeStruct((B, C, HW), x3.dtype),
        grid_spec=pltpu.PrefetchScalarGridSpec(
            num_scalar_prefetch=0,
            grid=(B // TB,),
            in_specs=[
                pl.BlockSpec((1, K), lambda b: (0, 0),
                             memory_space=pltpu.MemorySpace.SMEM),
                pl.BlockSpec((TB, C, HW), lambda b: (b, 0, 0)),
            ],
            out_specs=pl.BlockSpec((TB, C, HW), lambda b: (b, 0, 0)),
        ),
        compiler_params=pltpu.CompilerParams(
            dimension_semantics=("parallel",),
            vmem_limit_bytes=_vmem_limit(need),
        ),
    )(w_mid, x3)


# ---------------------------------------------------------------------------
# Path 1b: fused single-pass kernel, grouped lane-dense layout (B, C//g, g*HW)
# for HW not a multiple of 128 (g*HW % 128 == 0).  Input DMA, output store and
# HBM writeback are all lane-dense; the pool uses g small lane slices.
# ---------------------------------------------------------------------------
def _eca_fused_grouped(xg, w_mid, K, pad, TB, g, HW):
    B, Cg, GHW = xg.shape                                    # GHW == g * HW
    inv_hw = 1.0 / HW

    def kernel(w_ref, x_ref, o_ref):
        xblk = x_ref[...]                                    # (TB, Cg, GHW)
        p_list = []
        for i in range(g):                                   # g is small & static
            seg = xblk[:, :, i * HW:(i + 1) * HW]            # (TB, Cg, HW)
            p_list.append(jnp.sum(seg, axis=-1, dtype=jnp.float32) * inv_hw)
        attn = _grouped_conv_sigmoid(p_list, w_ref, K, pad)  # list of (TB, Cg)
        pieces = []
        for i in range(g):
            seg = xblk[:, :, i * HW:(i + 1) * HW]
            pieces.append(seg * attn[i].astype(seg.dtype)[:, :, None])
        o_ref[...] = jnp.concatenate(pieces, axis=-1)        # one dense store

    blk = _padded_block_bytes(Cg, GHW, xg.dtype.itemsize) * TB
    need = 6 * blk + (4 << 20)
    return pl.pallas_call(
        kernel,
        out_shape=jax.ShapeDtypeStruct((B, Cg, GHW), xg.dtype),
        grid_spec=pltpu.PrefetchScalarGridSpec(
            num_scalar_prefetch=0,
            grid=(B // TB,),
            in_specs=[
                pl.BlockSpec((1, K), lambda b: (0, 0),
                             memory_space=pltpu.MemorySpace.SMEM),
                pl.BlockSpec((TB, Cg, GHW), lambda b: (b, 0, 0)),
            ],
            out_specs=pl.BlockSpec((TB, Cg, GHW), lambda b: (b, 0, 0)),
        ),
        compiler_params=pltpu.CompilerParams(
            dimension_semantics=("parallel",),
            vmem_limit_bytes=_vmem_limit(need),
        ),
    )(w_mid, xg)


# ---------------------------------------------------------------------------
# Path 2: spatially tiled two-pass path (samples too large for VMEM).
# ---------------------------------------------------------------------------
def _eca_tiled(x3, w_taps, K, pad, spatial_tile, pool_splits):
    B, C, HW = x3.shape
    itemsize = x3.dtype.itemsize
    budget = min(24 << 20, _vmem_budget_bytes() // 3)

    if spatial_tile is None:
        ts = max(128, (budget // (4 * _ceil_to(C, 8) * itemsize)) // 128 * 128)
    else:
        ts = int(spatial_tile)
    if HW >= 128:
        ts = min(ts, max(128, (HW // 128) * 128))            # lane-dense, ts <= HW
    else:
        ts = HW
    n_s = pl.cdiv(HW, ts)

    # Spatial-outer split keeps both v7x TensorCores busy when B is small.
    if pool_splits is None:
        target = 1 if B >= 8 else min(n_s, max(1, 8 // B))
    else:
        target = min(n_s, max(1, int(pool_splits)))
    n_inner = pl.cdiv(n_s, target)
    n_outer = pl.cdiv(n_s, n_inner)

    ragged = (HW % ts) != 0
    extra = (n_outer * n_inner) > n_s
    dense_cut = (n_s - 1) if ragged else n_s

    # Pass 1: accumulate pooled sums; masking runs only on the ragged last tile
    # and on (clamped) padding steps of the outer split.
    def pool_kernel(x_ref, sum_ref):
        o = pl.program_id(1)
        s = pl.program_id(2)
        tile = o * n_inner + s                               # logical spatial tile

        @pl.when(s == 0)
        def _():
            sum_ref[...] = jnp.zeros_like(sum_ref)

        def dense_add():
            sum_ref[...] += jnp.sum(x_ref[...], axis=-1,
                                    dtype=jnp.float32)[:, None, :]

        def masked_add():
            xblk = x_ref[...]
            lane = jax.lax.broadcasted_iota(jnp.int32, xblk.shape, 2) + tile * ts
            xm = jnp.where(lane < HW, xblk, jnp.zeros_like(xblk))
            sum_ref[...] += jnp.sum(xm, axis=-1, dtype=jnp.float32)[:, None, :]

        if not ragged and not extra:
            dense_add()
        else:
            pl.when(tile < dense_cut)(dense_add)
            pl.when(tile >= dense_cut)(masked_add)

    need_pool = 2 * _padded_block_bytes(C, ts, itemsize) \
        + 2 * _padded_block_bytes(C, ts, 4) + (2 << 20)
    sums = pl.pallas_call(
        pool_kernel,
        out_shape=jax.ShapeDtypeStruct((B * n_outer, 1, C), jnp.float32),
        grid_spec=pltpu.PrefetchScalarGridSpec(
            num_scalar_prefetch=0,
            grid=(B, n_outer, n_inner),
            in_specs=[pl.BlockSpec(
                (1, C, ts),
                lambda b, o, s: (b, 0, jnp.minimum(o * n_inner + s, n_s - 1)))],
            out_specs=pl.BlockSpec((1, 1, C),
                                   lambda b, o, s: (b * n_outer + o, 0, 0)),
        ),
        compiler_params=pltpu.CompilerParams(
            dimension_semantics=("parallel", "parallel", "arbitrary"),
            vmem_limit_bytes=_vmem_limit(need_pool),
        ),
    )(x3)

    # Tiny JAX epilogue: finish the mean, K-tap conv, sigmoid (negligible traffic).
    pooled = sums.reshape(B, n_outer, C).sum(axis=1) * (1.0 / HW)     # (B, C)
    padded = jnp.pad(pooled, ((0, 0), (pad, pad))) if pad > 0 else pooled
    conv = jnp.zeros_like(pooled)
    for k in range(K):
        conv = conv + w_taps[k] * padded[:, k:k + C]
    attn = jax.nn.sigmoid(conv).reshape(B, 1, C)                      # f32

    # Pass 2: pure lane-broadcast scale.
    def scale_kernel(a_ref, x_ref, o_ref):
        xblk = x_ref[...]                                    # (1, C, ts)
        o_ref[...] = xblk * a_ref[0].astype(xblk.dtype)[:, :, None]

    need_scale = 4 * _padded_block_bytes(C, ts, itemsize) + (2 << 20)
    return pl.pallas_call(
        scale_kernel,
        out_shape=jax.ShapeDtypeStruct((B, C, HW), x3.dtype),
        grid_spec=pltpu.PrefetchScalarGridSpec(
            num_scalar_prefetch=0,
            grid=(B, n_s),
            in_specs=[
                pl.BlockSpec((1, 1, C), lambda b, s: (b, 0, 0)),
                pl.BlockSpec((1, C, ts), lambda b, s: (b, 0, s)),
            ],
            out_specs=pl.BlockSpec((1, C, ts), lambda b, s: (b, 0, s)),
        ),
        compiler_params=pltpu.CompilerParams(
            dimension_semantics=("parallel", "parallel"),
            vmem_limit_bytes=_vmem_limit(need_scale),
        ),
    )(attn, x3)


# ---------------------------------------------------------------------------
# Public wrapper.
# ---------------------------------------------------------------------------
def eca_forward(x, conv_weight, *, spatial_tile=None, force_tiled=False,
                pool_splits=None):
    """x: (B, C, H, W) NCHW; conv_weight: (1,1,K,K) Conv2d or (1,1,K) Conv1d weight."""
    B, C, H, W = x.shape
    HW = H * W
    itemsize = jnp.dtype(x.dtype).itemsize

    w_taps, K, pad = _effective_taps(conv_weight)
    w_mid = w_taps.reshape(1, K)

    # NCHW -> (B, C, H*W): a pure reshape of the contiguous buffer (no transpose).
    x3 = x.reshape(B, C, HW)

    # Lane-dense grouping when HW is not a multiple of 128: view each sample as
    # (C // g, g*HW) with g*HW % 128 == 0 (also a free reshape).
    g = 1
    if HW % 128 != 0:
        gg = 128 // math.gcd(HW, 128)
        if gg <= 32 and C % gg == 0 and (C // gg) % 8 == 0:
            g = gg
        # else: keep the (C, HW) view; lanes pad HW->ceil128(HW).
        # TODO(synk): HW with large gcd-deficit vs 128 (e.g. 7x7=49) and small C
        # still uses the lane-padded layout; a fully flat per-sample layout would
        # need an in-kernel segment reduce that is not worth the complexity here.

    if g > 1:
        sample_blk = _padded_block_bytes(C // g, g * HW, itemsize)
    else:
        sample_blk = _padded_block_bytes(C, HW, itemsize)

    need_one = 6 * sample_blk + (4 << 20)
    fused_ok = (need_one <= _vmem_budget_bytes()) and not force_tiled

    if fused_ok:
        TB = _pick_tb(B, sample_blk)
        if g > 1:
            xg = x3.reshape(B, C // g, g * HW)
            out = _eca_fused_grouped(xg, w_mid, K, pad, TB, g, HW)
        else:
            out = _eca_fused(x3, w_mid, K, pad, TB)
    else:
        out = _eca_tiled(x3, w_taps, K, pad, spatial_tile, pool_splits)

    return out.reshape(B, C, H, W)


def eca_reference(x, conv_weight):
    """Pure-JAX reference of the same math (f32), for correctness checks."""
    B, C, H, W = x.shape
    w_taps, K, pad = _effective_taps(conv_weight)
    xf = x.astype(jnp.float32)
    pooled = jnp.mean(xf, axis=(2, 3))                       # (B, C)
    padded = jnp.pad(pooled, ((0, 0), (pad, pad)))
    conv = sum(w_taps[k] * padded[:, k:k + C] for k in range(K))
    attn = jax.nn.sigmoid(conv)[:, :, None, None]
    return xf * attn


if __name__ == "__main__":
    key = jax.random.PRNGKey(0)
    k1, k2, k3, k4, kw, kw5 = jax.random.split(key, 6)

    conv_weight = 0.3 * jax.random.normal(kw, (1, 1, 3, 3), dtype=jnp.float32)

    # 1) Standard fused path (HW = 256, already a multiple of 128).
    x = jax.random.normal(k1, (2, 4, 16, 16), dtype=jnp.float32)
    out = jax.block_until_ready(eca_forward(x, conv_weight))
    ref = eca_reference(x, conv_weight)
    assert out.shape == x.shape, (out.shape, x.shape)
    assert jnp.allclose(out, ref, atol=1e-5, rtol=1e-5), "fused path mismatch"

    # 2) Grouped lane-dense fused path (HW = 144 is not a multiple of 128 -> g = 8).
    x2 = jax.random.normal(k2, (2, 64, 12, 12), dtype=jnp.float32)
    out2 = jax.block_until_ready(eca_forward(x2, conv_weight))
    ref2 = eca_reference(x2, conv_weight)
    assert jnp.allclose(out2, ref2, atol=1e-5, rtol=1e-5), "grouped path mismatch"

    # 2b) Grouped path with k_size=5 (conv taps crossing group boundaries).
    conv_weight5 = 0.2 * jax.random.normal(kw5, (1, 1, 5, 5), dtype=jnp.float32)
    out2b = jax.block_until_ready(eca_forward(x2, conv_weight5))
    ref2b = eca_reference(x2, conv_weight5)
    assert jnp.allclose(out2b, ref2b, atol=1e-5, rtol=1e-5), "grouped k=5 mismatch"

    # 3) Tiled two-pass path (forced): exercises the spatial-outer split with a
    #    non-dividing split (one fully masked step), the ragged last tile, and
    #    the JAX epilogue.
    x3 = jax.random.normal(k3, (1, 8, 24, 24), dtype=jnp.float32)
    out3 = jax.block_until_ready(
        eca_forward(x3, conv_weight, force_tiled=True, spatial_tile=128,
                    pool_splits=3))
    ref3 = eca_reference(x3, conv_weight)
    assert jnp.allclose(out3, ref3, atol=1e-5, rtol=1e-5), "tiled path mismatch"

    # 4) bf16 fused path (chunked f32 pooled accumulation).
    x4 = jax.random.normal(k4, (1, 8, 48, 48), dtype=jnp.bfloat16)
    out4 = jax.block_until_ready(eca_forward(x4, conv_weight))
    ref4 = eca_reference(x4, conv_weight)
    assert jnp.allclose(out4.astype(jnp.float32), ref4, atol=5e-2, rtol=5e-2), \
        "bf16 fused path mismatch"

    print("KERNEL_OK")
</pallas_src>

<mosaic_0001>
module attributes {stable_mosaic.version = 11 : i64} {
  func.func @kernel(%arg0: i32, %arg1: memref<1x3xf32, #tpu.memory_space<smem>>, %arg2: memref<1x4x256xf32, #tpu.memory_space<vmem>>, %arg3: memref<1x4x256xf32, #tpu.memory_space<vmem>>) attributes {dimension_semantics = [#tpu.dimension_semantics<parallel>], iteration_bounds = array<i64: 2>, scalar_prefetch = 0 : i64, scratch_operands = 0 : i64, tpu.core_type = #tpu.core_type<tc>, window_params = [{transform_indices = @transform_0, window_bounds = array<i64: 1, 3>}, {transform_indices = @transform_1, window_bounds = array<i64: 1, 4, 256>}, {transform_indices = @transform_2, window_bounds = array<i64: 1, 4, 256>}]} {
    %c0 = arith.constant 0 : index
    %c0_0 = arith.constant 0 : index
    %c0_1 = arith.constant 0 : index
    %0 = vector.load %arg2[%c0, %c0_0, %c0_1] : memref<1x4x256xf32, #tpu.memory_space<vmem>>, vector<1x4x256xf32>
    %cst = arith.constant dense<0.000000e+00> : vector<1x4xf32>
    %1 = vector.multi_reduction <add>, %0, %cst [2] : vector<1x4x256xf32> to vector<1x4xf32>
    %cst_2 = arith.constant 3.906250e-03 : f32
    %2 = vector.broadcast %cst_2 : f32 to vector<1x4xf32>
    %3 = arith.mulf %1, %2 : vector<1x4xf32>
    %cst_3 = arith.constant 0.000000e+00 : f32
    %4 = vector.broadcast %cst_3 : f32 to vector<1x1xf32>
    %5 = tpu.concatenate %4, %3, %4 in 1 : vector<1x1xf32>, vector<1x4xf32>, vector<1x1xf32> -> vector<1x6xf32>
    %cst_4 = arith.constant 0.000000e+00 : f32
    %6 = vector.broadcast %cst_4 : f32 to vector<1x4xf32>
    %c0_5 = arith.constant 0 : index
    %c0_6 = arith.constant 0 : index
    %7 = memref.load %arg1[%c0_5, %c0_6] : memref<1x3xf32, #tpu.memory_space<smem>>
    %8 = vector.extract_strided_slice %5 {offsets = [0, 0], sizes = [1, 4], strides = [1, 1]} : vector<1x6xf32> to vector<1x4xf32>
    %9 = vector.broadcast %7 : f32 to vector<1x4xf32>
    %10 = arith.mulf %9, %8 : vector<1x4xf32>
    %11 = arith.addf %6, %10 : vector<1x4xf32>
    %c0_7 = arith.constant 0 : index
    %c1 = arith.constant 1 : index
    %12 = memref.load %arg1[%c0_7, %c1] : memref<1x3xf32, #tpu.memory_space<smem>>
    %13 = vector.extract_strided_slice %5 {offsets = [0, 1], sizes = [1, 4], strides = [1, 1]} : vector<1x6xf32> to vector<1x4xf32>
    %14 = vector.broadcast %12 : f32 to vector<1x4xf32>
    %15 = arith.mulf %14, %13 : vector<1x4xf32>
    %16 = arith.addf %11, %15 : vector<1x4xf32>
    %c0_8 = arith.constant 0 : index
    %c2 = arith.constant 2 : index
    %17 = memref.load %arg1[%c0_8, %c2] : memref<1x3xf32, #tpu.memory_space<smem>>
    %18 = vector.extract_strided_slice %5 {offsets = [0, 2], sizes = [1, 4], strides = [1, 1]} : vector<1x6xf32> to vector<1x4xf32>
    %19 = vector.broadcast %17 : f32 to vector<1x4xf32>
    %20 = arith.mulf %19, %18 : vector<1x4xf32>
    %21 = arith.addf %16, %20 : vector<1x4xf32>
    %22 = arith.negf %21 : vector<1x4xf32>
    %23 = math.exp %22 : vector<1x4xf32>
    %cst_9 = arith.constant 1.000000e+00 : f32
    %24 = vector.broadcast %cst_9 : f32 to vector<1x4xf32>
    %25 = arith.addf %24, %23 : vector<1x4xf32>
    %26 = arith.divf %24, %25 : vector<1x4xf32>
    %27 = vector.shape_cast %26 : vector<1x4xf32> to vector<1x4x1xf32>
    %28 = vector.broadcast %27 : vector<1x4x1xf32> to vector<1x4x256xf32>
    %29 = arith.mulf %0, %28 : vector<1x4x256xf32>
    %c0_10 = arith.constant 0 : index
    %c0_11 = arith.constant 0 : index
    %c0_12 = arith.constant 0 : index
    %30 = vector.load %arg3[%c0_10, %c0_11, %c0_12] : memref<1x4x256xf32, #tpu.memory_space<vmem>>, vector<1x4x256xf32>
    tpu.vector_store %arg3[%c0_10, %c0_11, %c0_12], %29 {strides = array<i32>} : memref<1x4x256xf32, #tpu.memory_space<vmem>>, vector<1x4x256xf32>,
    return
  }
  func.func @transform_0(%arg0: i32) -> (i32, i32) {
    %c0_i32 = arith.constant 0 : i32
    %c0_i32_0 = arith.constant 0 : i32
    %c0_i32_1 = arith.constant 0 : i32
    return %c0_i32, %c0_i32_0 : i32, i32
  }
  func.func @transform_1(%arg0: i32) -> (i32, i32, i32) {
    %c0_i32 = arith.constant 0 : i32
    %c0_i32_0 = arith.constant 0 : i32
    %c0_i32_1 = arith.constant 0 : i32
    return %arg0, %c0_i32, %c0_i32_0 : i32, i32, i32
  }
  func.func @transform_2(%arg0: i32) -> (i32, i32, i32) {
    %c0_i32 = arith.constant 0 : i32
    %c0_i32_0 = arith.constant 0 : i32
    %c0_i32_1 = arith.constant 0 : i32
    return %arg0, %c0_i32, %c0_i32_0 : i32, i32, i32
  }
}

</mosaic_0001>

<bundles_post_ra>
// kernel: tpu_custom_call.1
= control target key start
LH: loop header
LB: loop body
LE: loop exit
PB: predicated region body
PF: predicated region fallthrough
CT: control target
= control target key end

     0   :  { %7 = vsyncpa [#allocation5], 0  ;;  %s768_s0 = inlined_call_operand.hbm [shape: f32[1,3], index: 0, kind: input, shape index: {}]   ;;  %s769_s1 = inlined_call_operand.hbm [shape: f32[2,4,256], index: 1, kind: input, shape index: {}]   ;;  %s770_s2 = inlined_call_operand.hbm [shape: f32[2,4,256], index: 2, kind: output, shape index: {}]  }
   0x1   :  { %8 = vsyncpa [#allocation3], 0 }
   0x2   :  { %10 = vsyncpa [#allocation3 + $0x1], 0 }
   0x3   :  { %11 = vsyncpa [#allocation4], 0 }
   0x4   :  { %13 = vsyncpa [#allocation4 + $0x1], 0  ;;  %s559_s9 = smov 0   ;;  %s561_s10 = smov 0  }
   0x5   :  { %s563_s11 = smov 0   ;;  %s565_s12 = smov 0  }
   0x6 LB: > { %s580_s13 = sadd.s32 4294967295, %s536_s12   ;;  %s337_s14 = sadd.s32 4294967294, %s536_s12   ;;  %s536_s12 = sphi %s565_s12, %s791_s12   ;;  %s532_s11 = sphi %s563_s11, %s790_s11   ;;  %s528_s10 = sphi %s561_s10, %s789_s10   ;;  %s524_s9 = sphi %s559_s9, %s788_s9  }
   0x7   : > { %p60_p0 = scmp.ne.s32.totalorder %s528_s10, %s524_s9  ;;  %p771_p1 = scmp.eq.s32.totalorder %s580_s13, 0 }
   0x8   : > { %p90_p3 = scmp.eq.s32.totalorder %s337_s14, 1  ;;  %p338_p5 = scmp.ge.s32.totalorder %s536_s12, 1 }
   0x9   : > { %p589_p4 = por %p771_p1, %p60_p0  ;;  %p97_p7 = scmp.lt.s32.totalorder %s536_s12, 3 }
   0xa   : > { %p594_p6 = por %p90_p3, %p60_p0  ;;  %s605_s18 = sadd.s32 1, %s536_s12  }
   0xb   : > { %s774_s15 = scalar_select %p589_p4, 1, 0 }
   0xc   : > { %s775_s16 = scalar_select %p594_p6, 1, 0 }
   0xd   : > { %p599_p8 = pnand %p338_p5, %p97_p7  ;;  %s44_s19 = ssub.s32 %s536_s12, %s605_s18 }
   0xe   : > { %s47_s20 = sadd.s32 1, %s532_s11  ;;  %p618_p12 = scmp.eq.s32.totalorder %s44_s19, 0 }
   0xf   : > { %p366_p10 = pneg %p599_p8  ;;  %p54_p13 = scmp.ne.s32.totalorder %s532_s11, %s528_s10 }
  0x10   : > { %p55_p0 = scmp.eq.s32.totalorder %s536_s12, 0  ;;  %p379_p3 = scmp.lt.s32.totalorder %s536_s12, 2 }
  0x11   : > { %p614_p11 = pnand %p366_p10, %p771_p1  ;;  %s423_s25 = scalar_lea.hbm %s768_s0, 16 }
  0x12   : > { %p424_p5 = scmp.ne.s32.totalorder %s768_s0, %s423_s25  ;;  %p430_p1 = scmp.lt.u32.totalorder %s423_s25, %s768_s0 }
  0x13   : > { %p425_p7 = pneg %p614_p11 }
  0x15   : > { %p426_p10 = pnand %p425_p7, %p424_p5 }
  0x17   : > { %p427_p9 = pneg %p426_p10 }
  0x19   : > { %p432_p2 = pnand %p430_p1, %p427_p9 }
  0x1b   : > { %435 = shalt.err (!%p432_p2)
}
  0x1c   : > { %s538_s30 = smov [#allocation2]   ;;  %p56_p1 = por %p55_p0, %p54_p13 }
  0x1d   : > { %369 = dma.hbm_to_smem (!%p614_p11), %s768_s0, 16, %s538_s30, [#allocation5]  }
  0x1e   : > { %s645_s5 = scalar_select %p618_p12, %s532_s11, %s47_s20  }
  0x1f   : > { %p779_p2 = scmp.eq.s32.totalorder %s580_s13, 1  ;;  %s119_s7 = sand.u32 1, %s532_s11  }
  0x20   : > { %s356_s8 = sshll.u32 %s536_s12, 7  ;;  %s341_s14 = sshll.u32 %s119_s7, 3 }
  0x21   : > { %p657_p9 = por %p779_p2, %p54_p13  ;;  %s666_s23 = scalar_lea.hbm %s769_s1, %s356_s8 }
  0x22   : > { %s123_s20 = scalar_lea.vmem [#allocation6], %s341_s14  ;;  %p670_p11 = pnand %p379_p3, %p56_p1 }
  0x23   : > { %s780_s6 = scalar_select %p657_p9, 1, 0 }
  0x24   : > { %s131_s22 = sshll.u32 %s123_s20, 4  ;;  %s120_s25 = scalar_lea.sflag [#allocation3], %s119_s7  ;;  %s674_s22 = int_to_ptr.vmem [resolvable:$true] %s131_s22 }
  0x25   : > { %s436_s26 = scalar_lea.hbm %s666_s23, 128  ;;  %p438_p13 = pneg %p670_p11 }
  0x26   : > { %p437_p12 = scmp.ne.s32.totalorder %s666_s23, %s436_s26  ;;  %s441_s29 = scalar_lea.hbm %s769_s1, 256 }
  0x27   : > { %p442_p3 = scmp.lt.u32.totalorder %s666_s23, %s769_s1  ;;  %p443_p7 = scmp.lt.u32.totalorder %s441_s29, %s436_s26 }
  0x28   : > { %p439_p0 = pnand %p438_p13, %p437_p12  ;;  %p445_p1 = scmp.lt.u32.totalorder %s436_s26, %s666_s23 }
  0x29   : > { %p444_p10 = por %p443_p7, %p442_p3 }
  0x2a   : > { %p440_p5 = pneg %p439_p0 }
  0x2b   : > { %p446_p2 = por %p445_p1, %p444_p10 }
  0x2d   : > { %p447_p6 = pnand %p446_p2, %p440_p5 }
  0x2f   : > { %450 = shalt.err (!%p447_p6)
}
  0x30   : > { %s451_s4 = scalar_lea.vmem %s674_s22, 128  ;;  %s539_s7 = smov [#allocation6]  }
  0x31   : > { %p452_p12 = scmp.ne.s32.totalorder %s674_s22, %s451_s4  ;;  %s456_s8 = sshll.u32 %s539_s7, 4  ;;  %s457_s8 = int_to_ptr.vmem [resolvable:$false] %s456_s8 }
  0x32   : > { %s458_s14 = scalar_lea.vmem %s457_s8, 256  ;;  %p459_p4 = scmp.lt.s32.totalorder %s674_s22, %s457_s8 }
  0x33   : > { %p454_p0 = pnand %p452_p12, %p438_p13  ;;  %p460_p3 = scmp.lt.s32.totalorder %s458_s14, %s451_s4 }
  0x35   : > { %p455_p9 = pneg %p454_p0  ;;  %p461_p7 = por %p460_p3, %p459_p4 }
  0x37   : > { %p462_p10 = pnand %p461_p7, %p455_p9 }
  0x39   : > { %465 = shalt.err (!%p462_p10)
}
  0x3a   : > { %373 = dma.hbm_to_vmem [thread:$0]  (!%p670_p11), %s666_s23, 128, %s674_s22, %s120_s25  }
  0x3b   : > { %140 = sbr.rel (%p599_p8) target bundleno = 509 (0x1fd), region = 28  ;;  %p782_p6 = scmp.eq.s32.totalorder (!%p599_p8), %s580_s13, 0 }
  0x42   : > { %511 = dma.done.wait (%p782_p6), [#allocation5], 16   ;;  %p783_p13 = pmov %p782_p6 }
  0x43   : > { %s708_s19 = sand.u32 1, %s528_s10   ;;  %p784_p4 = scmp.ne.s32.totalorder %s774_s15, 0 }
  0x44   : > { %513 = vsyncadd (%p783_p13), [#allocation5], 4294967280  ;;  %s346_s21 = sshll.u32 %s708_s19, 3  ;;  %s147_s20 = scalar_lea.sflag [#allocation3], %s708_s19 }
  0x45   : > { %s150_s23 = scalar_lea.vmem [#allocation6], %s346_s21 }
  0x46   : > { %515 = dma.done.wait (%p784_p4), %s147_s20, 128  }
  0x47   : > { %517 = vsyncadd (%p784_p4), %s147_s20, 4294967168 }
  0x48   : > { %155 = sfence }
  0x49   : > { %v172_v0 = vld [vmem:[%s150_s23] sm:$0xff]  ;;  %vm176_vm0 = vcmask 1043456   ;;  %v184_v5 = vlaneseq  ;;  %s349_s17 = sld [smem:[#allocation2 + $0x2]]  ;;  %s348_s22 = sld [smem:[#allocation2 + $0x1]]  ;;  %vm192_vm1 = vcmask 7168   ;;  %vm194_vm2 = vcmask 39936  }
  0x4a   : > { %v174_v1 = vcombine.high %v172_v0, %v172_v0  ;;  %v177_v2 = vsel %vm176_vm0, %v172_v0, 0.0  ;;  %s540_s15 = smov 126   ;;  %s541_s24 = smov 127   ;;  %v542_v31 = vmov 839922192  }
  0x4b   : > { %v185_v6 = vand.u32 127, %v184_v5  ;;  %v188_v8 = vshrl.u32 %v184_v5, 7  ;;  %s196_s25 = sld [smem:[#allocation2]]  ;;  %v231_v32 = vunpack.c.l.s4 %v542_v31  ;;  %s357_s26 = sshll.u32 %s580_s13, 7 }
  0x4c   : > { %v178_v3 = vsel %vm176_vm0, %v174_v1, 0.0  ;;  %s171_s27 = scalar_lea.vmem [#allocation7], %s346_s21  ;;  %s724_s3 = scalar_lea.hbm %s770_s2, %s357_s26 }
  0x4d   : > { %v179_v4 = vadd.f32 %v178_v3, %v177_v2  ;;  %v186_v7 = vadd.s32 4294967295, %v185_v6  ;;  %v224_v28 = vsub.s32 0, %v188_v8  ;;  %v232_v33 = vunpack.c.0.s8 %v231_v32  ;;  %s255_s28 = sshll.u32 %s171_s27, 4  ;;  %s241_s4 = scalar_lea.sflag [#allocation4], %s708_s19  ;;  %s726_s28 = int_to_ptr.vmem [resolvable:$true] %s255_s28 }
  0x4e   : > { %s466_s7 = scalar_lea.vmem %s726_s28, 128  ;;  %p785_p9 = scmp.ne.s32.totalorder %s780_s6, 0 }
  0x4f   : > { %180 = vadd.xlane.f32.xlu0 %v179_v4  ;;  %v189_v9 = vsub.s32 %v186_v7, %v188_v8  ;;  %v209_v13 = vstv %s349_s17  ;;  %v201_v14 = vstv %s348_s22  ;;  %v235_v34 = vsub.s32 %v232_v33, %v188_v8  ;;  %p467_p8 = scmp.ne.s32.totalorder %s726_s28, %s466_s7  ;;  %s543_s13 = smov [#allocation7]  }
  0x50   : > { %s470_s8 = sshll.u32 %s543_s13, 4  ;;  %s471_s8 = int_to_ptr.vmem [resolvable:$false] %s470_s8 }
  0x51   : > { %v197_v19 = vstv %s196_s25  ;;  %p468_p11 = pnand %p467_p8, %p785_p9  ;;  %s472_s14 = scalar_lea.vmem %s471_s8, 256 }
  0x52   : > { %p473_p1 = scmp.lt.s32.totalorder %s726_s28, %s471_s8  ;;  %p474_p2 = scmp.lt.s32.totalorder %s472_s14, %s466_s7 }
  0x53   : > { %p469_p5 = pneg %p468_p11 }
  0x54   : > { %p475_p12 = por %p474_p2, %p473_p1 }
  0x56   : > { %p476_p0 = pnand %p475_p12, %p469_p5 }
  0xdc   : > { %v181_v10 = vpop.xlane.xlu0 %180 }
  0xdd   : > { %v182_v11 = vmul.f32 0.00390625, %v181_v10 }
  0xdf   : > { %v190_v12 = vrot.slane %v182_v11, %v189_v9 }
  0xe1   : > { %v193_v15 = vsel %vm192_vm1, 0.0, %v190_v12 }
  0xe2   : > { %v195_v16 = vsel %vm194_vm2, %v193_v15, 0.0 }
  0xe3   : > { %v210_v17 = vmul.f32 %v209_v13, %v195_v16  ;;  %v202_v18 = vmul.f32 %v201_v14, %v195_v16  ;;  %v198_v20 = vmul.f32 %v197_v19, %v195_v16 }
  0xe5   : > { %212 = vrot.lane.b32.xlu1 %v210_v17, %s540_s15  ;;  %204 = vrot.lane.b32.xlu0 %v202_v18, %s541_s24 }
 0x157   : > { %v205_v21 = vpop.permute.xlu0 %204  ;;  %v213_v23 = vpop.permute.xlu1 %212 }
 0x158   : > { %v207_v22 = vadd.f32 %v205_v21, %v198_v20 }
 0x15a   : > { %v215_v24 = vadd.f32 %v213_v23, %v207_v22 }
 0x15c   : > { %v350_v25 = vmul.f32 -1.442695, %v215_v24 }
 0x15e   : > { %419 = vpow2.f32 %v350_v25 }
 0x168   : > { %v420_v26 = vpop.eup %419 }
 0x169   : > { %v219_v27 = vadd.f32 1.0, %v420_v26 }
 0x16b   : > { %421 = vrcp.f32 %v219_v27 }
 0x175   : > { %v422_v29 = vpop.eup %421 }
 0x176   : > { %v225_v30 = vrot.slane %v422_v29, %v224_v28 }
 0x178   : > { %227 = vbcast.lane.b32.xlu1 %v225_v30, 256 }
 0x1ea   : > { %v228_v35 = vpop.permute.xlu1 %227 }
 0x1eb   : > { %v236_v36 = vrot.slane %v228_v35, %v235_v34 }
 0x1ed   : > { %v238_v37 = vmul.f32 %v236_v36, %v172_v0 }
 0x1ef   : > { %239 = vst [vmem:[%s171_s27] sm:$0xff] %v238_v37 }
 0x1f0   : > { %479 = shalt.err (!%p476_p0)
}
 0x1f1   : > { %s480_s19 = scalar_lea.hbm %s724_s3, 128  ;;  %s484_s23 = scalar_lea.hbm %s770_s2, 256 }
 0x1f2   : > { %p481_p3 = scmp.ne.s32.totalorder %s724_s3, %s480_s19  ;;  %p485_p6 = scmp.lt.u32.totalorder %s724_s3, %s770_s2 }
 0x1f3   : > { %p486_p13 = scmp.lt.u32.totalorder %s484_s23, %s480_s19  ;;  %p488_p8 = scmp.lt.u32.totalorder %s480_s19, %s724_s3 }
 0x1f4   : > { %p482_p7 = pnand %p481_p3, %p785_p9 }
 0x1f5   : > { %p487_p4 = por %p486_p13, %p485_p6 }
 0x1f6   : > { %p483_p10 = pneg %p482_p7 }
 0x1f7   : > { %p489_p11 = por %p488_p8, %p487_p4 }
 0x1f9   : > { %p490_p5 = pnand %p489_p11, %p483_p10 }
 0x1fb   : > { %493 = shalt.err (!%p490_p5)
}
 0x1fc   : > { %364 = dma.vmem_to_hbm [thread:$0]  (%p785_p9), %s726_s28, 128, %s724_s3, %s241_s4  }
 0x1fd PF: > { %s267_s15 = sand.u32 1, %s524_s9   ;;  %p786_p1 = scmp.ne.s32.totalorder %s775_s16, 0 }
 0x1fe   : > { %p787_p2 = scmp.ge.s32.totalorder %s536_s12, 2  ;;  %s268_s24 = scalar_lea.sflag [#allocation4], %s267_s15 }
 0x200   : > { %p375_p12 = pnand %p787_p2, %p786_p1 }
 0x202   : > { %519 = dma.done.wait (!%p375_p12), %s268_s24, 128  }
 0x203   : > { %521 = vsyncadd (!%p375_p12), %s268_s24, 4294967168  ;;  %p16_p0 = scmp.ge.s32.totalorder %s605_s18, 4   ;;  %s788_s9 = smov %s528_s10 }
 0x204   : > { %s789_s10 = smov %s532_s11  ;;  %s790_s11 = smov %s645_s5 }
 0x205   : > { %s791_s12 = smov %s605_s18  ;;  %18 = sbr.rel (!%p16_p0) target bundleno = 6 (0x6), region = 78 }
 0x20c   :  { %273 = vsyncpa [#allocation3], 1 }
 0x20d   :  { %275 = vsyncpa [#allocation3 + $0x1], 1 }
 0x20e   :  { %276 = vsyncpa [#allocation4], 1 }
 0x20f   :  { %278 = vsyncpa [#allocation4 + $0x1], 1 }
 0x210   :  { %279 = vsyncpa [#allocation5], 1 }
 0x211   :  { %281 = vsyncpa [#allocation5 + $0x1], 1 }

</bundles_post_ra>
